<compile_context>
chip_gen: v7x
topology: tpu7x:2x2x1
jax: 0.10.0
libtpu: 0.0.40
codegen_flags: <defaults>
</compile_context>

<pallas_src>
import functools
import math

import numpy as np
import jax
import jax.numpy as jnp
from jax.experimental import pallas as pl
from jax.experimental.pallas import tpu as pltpu

F32 = jnp.float32
BF16 = jnp.bfloat16
INV_SQRT2 = 0.7071067811865476
LN_EPS = 1e-5


# ----------------------------- tiling helpers -------------------------------

def _round_up(x, m):
    return (x + m - 1) // m * m


def _pick_row_tile(m, target=512):
    """Row tile (multiple of 8). Forces >=2 grid steps when m allows so the
    grid can be split across v7x's two TensorCores and pipelining overlaps."""
    n_steps = max(2, pl.cdiv(m, target))
    tm = _round_up(pl.cdiv(m, n_steps), 8)
    return min(tm, _round_up(m, 8))


def _pick_window_tile(num_windows, n_tokens, num_img_windows, has_mask,
                      target_tokens=2048):
    """Windows per grid step.  rows = bw * n_tokens must be a multiple of 8;
    when a shift mask is present bw is additionally a multiple of the
    per-image window count so the (nW,N,N) mask broadcasts in-kernel."""
    align = 8 // math.gcd(n_tokens, 8)
    if has_mask:
        align = align * num_img_windows // math.gcd(align, num_img_windows)
    bw = max(1, target_tokens // n_tokens)
    bw = min(bw, max(1, pl.cdiv(num_windows, 2)))   # try for >= 2 grid steps
    return _round_up(max(bw, 1), align)


def _compiler_params(block_bytes):
    cap = 48 * 1024 * 1024                      # safe on v7x (64 MiB physical)
    try:
        cap = max(cap, int(pltpu.get_tpu_info().vmem_capacity_bytes) * 3 // 4)
    except Exception:
        pass
    limit = max(32 * 1024 * 1024, 2 * int(block_bytes) + (8 << 20))
    return pltpu.CompilerParams(dimension_semantics=("parallel",),
                                vmem_limit_bytes=int(min(limit, cap)))


# ------------------------------- kernels -------------------------------------

def _ln_kernel(x_ref, g_ref, b_ref, o_ref):
    x = x_ref[...].astype(F32)
    mu = jnp.mean(x, axis=-1, keepdims=True)
    xc = x - mu
    var = jnp.mean(xc * xc, axis=-1, keepdims=True)
    y = xc * jax.lax.rsqrt(var + LN_EPS) * g_ref[...] + b_ref[...]
    o_ref[...] = y.astype(o_ref.dtype)


def _ln_red_kernel(x_ref, hx_ref, g_ref, b_ref, wred_ref, br_ref, o_ref):
    # norm1(x), norm1(hx), lane-concat (free) -> single K=2C matmul with wred.
    def ln(v):
        mu = jnp.mean(v, axis=-1, keepdims=True)
        vc = v - mu
        var = jnp.mean(vc * vc, axis=-1, keepdims=True)
        return vc * jax.lax.rsqrt(var + LN_EPS) * g_ref[...] + b_ref[...]

    a = ln(x_ref[...].astype(F32)).astype(BF16)
    h = ln(hx_ref[...].astype(F32)).astype(BF16)
    cat = jnp.concatenate([a, h], axis=-1)              # (tm, 2C)
    acc = jnp.dot(cat, wred_ref[...], preferred_element_type=F32)
    o_ref[...] = (acc + br_ref[...]).astype(o_ref.dtype)


def _window_attention_kernel(*refs, num_heads, head_dim, n_tokens, scale,
                             has_mask, mask_repeat):
    if has_mask:
        (x_ref, mask_ref, wqkv_ref, bqkv_ref, relb_ref,
         wproj_ref, bproj_ref, o_ref) = refs
    else:
        (x_ref, wqkv_ref, bqkv_ref, relb_ref,
         wproj_ref, bproj_ref, o_ref) = refs

    rows, C = x_ref.shape                      # rows = bw * n_tokens
    bw = rows // n_tokens
    xb = x_ref[...].astype(BF16)
    qkv = jnp.dot(xb, wqkv_ref[...], preferred_element_type=F32) + bqkv_ref[...]
    qkv = qkv.reshape(bw, n_tokens, 3 * C)     # split leading (sublane) dim
    if has_mask:
        nw = mask_ref.shape[0]
        mask = mask_ref[...]                   # (nW, N, N) f32

    outs = []
    for h in range(num_heads):                 # static unroll over heads
        lo = h * head_dim
        q = qkv[:, :, lo:lo + head_dim] * scale
        k = qkv[:, :, C + lo:C + lo + head_dim]
        v = qkv[:, :, 2 * C + lo:2 * C + lo + head_dim]
        logits = jnp.einsum("wnd,wmd->wnm", q.astype(BF16), k.astype(BF16),
                            preferred_element_type=F32)
        logits = logits + relb_ref[h]
        if has_mask:
            logits = (logits.reshape(mask_repeat, nw, n_tokens, n_tokens)
                      + mask[None]).reshape(bw, n_tokens, n_tokens)
        logits = logits - jnp.max(logits, axis=-1, keepdims=True)
        p = jnp.exp(logits)
        p = p * pl.reciprocal(jnp.sum(p, axis=-1, keepdims=True), approx=True)
        outs.append(jnp.einsum("wnm,wmd->wnd", p.astype(BF16), v.astype(BF16),
                               preferred_element_type=F32))     # (bw, N, hd)

    # concat heads once -> single K=C projection matmul (full-depth MXU push)
    o = jnp.concatenate(outs, axis=-1).reshape(rows, C)
    out = jnp.dot(o.astype(BF16), wproj_ref[...], preferred_element_type=F32)
    o_ref[...] = (out + bproj_ref[...]).astype(o_ref.dtype)


def _mlp_block_kernel(s_ref, a_ref, g_ref, b_ref, w1_ref, b1_ref, w2_ref, b2_ref,
                      o_ref):
    s = s_ref[...].astype(F32) + a_ref[...].astype(F32)       # residual #1
    mu = jnp.mean(s, axis=-1, keepdims=True)
    sc = s - mu
    var = jnp.mean(sc * sc, axis=-1, keepdims=True)
    y = sc * jax.lax.rsqrt(var + LN_EPS) * g_ref[...] + b_ref[...]
    h = jnp.dot(y.astype(BF16), w1_ref[...], preferred_element_type=F32) + b1_ref[...]
    h = 0.5 * h * (1.0 + jax.lax.erf(h * INV_SQRT2))           # exact GELU, f32
    o = jnp.dot(h.astype(BF16), w2_ref[...], preferred_element_type=F32) + b2_ref[...]
    o_ref[...] = (s + o).astype(o_ref.dtype)                   # residual #2


# ------------------------------ pallas wrappers ------------------------------

def layernorm_pallas(x2d, g_r, b_r, *, target_rows=512):
    M, C = x2d.shape
    tm = _pick_row_tile(M, target_rows)
    grid = pl.cdiv(M, tm)
    Mp = grid * tm
    xp = jnp.pad(x2d, ((0, Mp - M), (0, 0))) if Mp != M else x2d
    block_bytes = 4 * tm * C + 2 * tm * C + 8 * C
    out = pl.pallas_call(
        _ln_kernel,
        out_shape=jax.ShapeDtypeStruct((Mp, C), BF16),
        grid_spec=pltpu.PrefetchScalarGridSpec(
            num_scalar_prefetch=0,
            grid=(grid,),
            in_specs=[
                pl.BlockSpec((tm, C), lambda i: (i, 0)),
                pl.BlockSpec((1, C), lambda i: (0, 0)),
                pl.BlockSpec((1, C), lambda i: (0, 0)),
            ],
            out_specs=pl.BlockSpec((tm, C), lambda i: (i, 0)),
        ),
        compiler_params=_compiler_params(block_bytes),
    )(xp, g_r, b_r)
    return out[:M]


def ln_red_pallas(x2d, hx2d, p, *, target_rows=512):
    M, C = x2d.shape
    tm = _pick_row_tile(M, target_rows)
    grid = pl.cdiv(M, tm)
    Mp = grid * tm
    if Mp != M:
        pad = ((0, Mp - M), (0, 0))
        x2d = jnp.pad(x2d, pad)
        hx2d = jnp.pad(hx2d, pad)
    block_bytes = 4 * (2 * tm * C) + 2 * tm * C + 2 * (2 * C * C) + 16 * C
    out = pl.pallas_call(
        _ln_red_kernel,
        out_shape=jax.ShapeDtypeStruct((Mp, C), BF16),
        grid_spec=pltpu.PrefetchScalarGridSpec(
            num_scalar_prefetch=0,
            grid=(grid,),
            in_specs=[
                pl.BlockSpec((tm, C), lambda i: (i, 0)),
                pl.BlockSpec((tm, C), lambda i: (i, 0)),
                pl.BlockSpec((1, C), lambda i: (0, 0)),
                pl.BlockSpec((1, C), lambda i: (0, 0)),
                pl.BlockSpec((2 * C, C), lambda i: (0, 0)),
                pl.BlockSpec((1, C), lambda i: (0, 0)),
            ],
            out_specs=pl.BlockSpec((tm, C), lambda i: (i, 0)),
        ),
        compiler_params=_compiler_params(block_bytes),
    )(x2d, hx2d, p["g1_r"], p["b1_r"], p["wred_bf16"], p["bred_r"])
    return out[:M]


def window_attention_pallas(xw, attn_mask, p, *, num_heads, target_tokens=2048):
    B_, N, C = xw.shape
    head_dim = C // num_heads
    scale = head_dim ** (-0.5)
    has_mask = attn_mask is not None
    nW = int(attn_mask.shape[0]) if has_mask else 1
    bw = _pick_window_tile(B_, N, nW, has_mask, target_tokens)
    grid = pl.cdiv(B_, bw)
    Bp = grid * bw
    x2 = xw.reshape(B_ * N, C)
    if Bp != B_:
        x2 = jnp.pad(x2, ((0, (Bp - B_) * N), (0, 0)))
    rows = bw * N
    mask_repeat = bw // nW if has_mask else 0

    in_specs = [pl.BlockSpec((rows, C), lambda i: (i, 0))]
    args = [x2]
    if has_mask:
        in_specs.append(pl.BlockSpec((nW, N, N), lambda i: (0, 0, 0)))
        args.append(attn_mask)
    in_specs += [
        pl.BlockSpec((C, 3 * C), lambda i: (0, 0)),
        pl.BlockSpec((1, 3 * C), lambda i: (0, 0)),
        pl.BlockSpec((num_heads, N, N), lambda i: (0, 0, 0)),
        pl.BlockSpec((C, C), lambda i: (0, 0)),
        pl.BlockSpec((1, C), lambda i: (0, 0)),
    ]
    args += [p["wqkv_bf16"], p["bqkv_r"], p["rel_bias"],
             p["wproj_bf16"], p["bproj_r"]]

    block_bytes = (2 * rows * C + 4 * rows * C         # x (bf16) + out (f32)
                   + 4 * rows * 3 * C                  # qkv intermediate
                   + 4 * (nW + num_heads) * N * N
                   + 2 * (C * 3 * C + C * C) + 16 * C)
    kern = functools.partial(_window_attention_kernel, num_heads=num_heads,
                             head_dim=head_dim, n_tokens=N, scale=scale,
                             has_mask=has_mask, mask_repeat=mask_repeat)
    out2 = pl.pallas_call(
        kern,
        out_shape=jax.ShapeDtypeStruct((Bp * N, C), F32),
        grid_spec=pltpu.PrefetchScalarGridSpec(
            num_scalar_prefetch=0,
            grid=(grid,),
            in_specs=in_specs,
            out_specs=pl.BlockSpec((rows, C), lambda i: (i, 0)),
        ),
        compiler_params=_compiler_params(block_bytes),
    )(*args)
    return out2[:B_ * N].reshape(B_, N, C)


def mlp_block_pallas(shortcut2d, attn2d, p, *, target_rows=512):
    M, C = shortcut2d.shape
    Hd = p["w1_bf16"].shape[1]
    tm = _pick_row_tile(M, target_rows)
    grid = pl.cdiv(M, tm)
    Mp = grid * tm
    if Mp != M:
        pad = ((0, Mp - M), (0, 0))
        shortcut2d = jnp.pad(shortcut2d, pad)
        attn2d = jnp.pad(attn2d, pad)
    block_bytes = (4 * (3 * tm * C + tm * Hd) + 2 * (2 * C * Hd)
                   + 4 * (3 * C + Hd))
    out = pl.pallas_call(
        _mlp_block_kernel,
        out_shape=jax.ShapeDtypeStruct((Mp, C), F32),
        grid_spec=pltpu.PrefetchScalarGridSpec(
            num_scalar_prefetch=0,
            grid=(grid,),
            in_specs=[
                pl.BlockSpec((tm, C), lambda i: (i, 0)),
                pl.BlockSpec((tm, C), lambda i: (i, 0)),
                pl.BlockSpec((1, C), lambda i: (0, 0)),
                pl.BlockSpec((1, C), lambda i: (0, 0)),
                pl.BlockSpec((C, Hd), lambda i: (0, 0)),
                pl.BlockSpec((1, Hd), lambda i: (0, 0)),
                pl.BlockSpec((Hd, C), lambda i: (0, 0)),
                pl.BlockSpec((1, C), lambda i: (0, 0)),
            ],
            out_specs=pl.BlockSpec((tm, C), lambda i: (i, 0)),
        ),
        compiler_params=_compiler_params(block_bytes),
    )(shortcut2d, attn2d, p["g2_r"], p["b2_r"],
      p["w1_bf16"], p["b1m_r"], p["w2_bf16"], p["b2m_r"])
    return out[:M]


# --------------------------- layout-only helpers -----------------------------

def window_partition(x, ws):
    B, H, W, C = x.shape
    x = x.reshape(B, H // ws, ws, W // ws, ws, C)
    x = jnp.transpose(x, (0, 1, 3, 2, 4, 5))
    return x.reshape(-1, ws, ws, C)


def window_reverse(windows, ws, H, W):
    B = windows.shape[0] // ((H // ws) * (W // ws))
    x = windows.reshape(B, H // ws, W // ws, ws, ws, -1)
    x = jnp.transpose(x, (0, 1, 3, 2, 4, 5))
    return x.reshape(B, H, W, -1)


# --------------------------- full block forward ------------------------------

def swin_block_forward_pallas(p, x, hx, input_resolution, num_heads):
    H, W = input_resolution
    B, L, C = x.shape
    assert L == H * W, "input feature has wrong size"
    ws, shift = p["window_size"], p["shift_size"]
    N = ws * ws
    shortcut2d = x.reshape(B * L, C)

    # K1: norm1 (+ optional hidden-state fusion via `red`); bf16 output.
    if hx is not None:
        z2 = ln_red_pallas(shortcut2d, hx.reshape(B * L, C), p)
    else:
        z2 = layernorm_pallas(shortcut2d, p["g1_r"], p["b1_r"])

    z = z2.reshape(B, H, W, C)
    if shift > 0:
        z = jnp.roll(z, shift=(-shift, -shift), axis=(1, 2))
    xw = window_partition(z, ws).reshape(-1, N, C)
    mask = p["attn_mask"] if shift > 0 else None

    # K2: window attention (rel-pos bias and bf16 weights precomputed; mask
    # passed untiled and broadcast in-kernel).
    aw = window_attention_pallas(xw, mask, p, num_heads=num_heads)
    aw = aw.reshape(-1, ws, ws, C)
    z = window_reverse(aw, ws, H, W)
    if shift > 0:
        z = jnp.roll(z, shift=(shift, shift), axis=(1, 2))
    attn2d = z.reshape(B * L, C)

    # K3: residual + norm2 + MLP + residual (fused)
    out2 = mlp_block_pallas(shortcut2d, attn2d, p)
    return out2.reshape(B, L, C)


def swin_blocks_forward_pallas(blocks, xt, hx, input_resolution, num_heads):
    outputs = []
    for i, p in enumerate(blocks):
        if i == 0:
            x = swin_block_forward_pallas(p, xt, hx, input_resolution, num_heads)
        elif i % 2 == 0:
            x = swin_block_forward_pallas(p, outputs[-1], xt, input_resolution, num_heads)
        else:
            x = swin_block_forward_pallas(p, outputs[-1], None, input_resolution, num_heads)
        outputs.append(x)
    return outputs[-1]


# --------------------------- pure-JAX reference ------------------------------
# Mirrors the kernels' numerics (bf16 matmul inputs, f32 accumulation).

def _mm_ref(a, w):
    return jnp.einsum("...k,kn->...n", a.astype(BF16), w.astype(BF16),
                      preferred_element_type=F32)


def _ln_ref(x, g, b):
    mu = jnp.mean(x, axis=-1, keepdims=True)
    xc = x - mu
    var = jnp.mean(xc * xc, axis=-1, keepdims=True)
    return xc * jax.lax.rsqrt(var + LN_EPS) * g + b


def _gelu_ref(x):
    return 0.5 * x * (1.0 + jax.lax.erf(x * INV_SQRT2))


def window_attention_ref(xw, mask_full, p, num_heads):
    B_, N, C = xw.shape
    hd = C // num_heads
    scale = hd ** (-0.5)
    qkv = _mm_ref(xw, p["wqkv"]) + p["bqkv"]
    relb = p["rpb_table"][p["rp_index"].reshape(-1)]
    relb = relb.reshape(N, N, num_heads).transpose(2, 0, 1)
    outs = []
    for h in range(num_heads):
        lo = h * hd
        q = qkv[..., lo:lo + hd] * scale
        k = qkv[..., C + lo:C + lo + hd]
        v = qkv[..., 2 * C + lo:2 * C + lo + hd]
        logits = jnp.einsum("wnd,wmd->wnm", q.astype(BF16), k.astype(BF16),
                            preferred_element_type=F32)
        logits = logits + relb[h] + mask_full
        logits = logits - jnp.max(logits, axis=-1, keepdims=True)
        pr = jnp.exp(logits)
        pr = pr / jnp.sum(pr, axis=-1, keepdims=True)
        outs.append(jnp.einsum("wnm,wmd->wnd", pr.astype(BF16), v.astype(BF16),
                               preferred_element_type=F32))
    a = jnp.concatenate(outs, axis=-1)
    return _mm_ref(a, p["wproj"]) + p["bproj"]


def swin_block_forward_ref(p, x, hx, input_resolution, num_heads):
    H, W = input_resolution
    B, L, C = x.shape
    ws, shift = p["window_size"], p["shift_size"]
    N = ws * ws
    shortcut = x
    z = _ln_ref(x, p["g1"], p["b1"])
    if hx is not None:
        zh = _ln_ref(hx, p["g1"], p["b1"])
        z = _mm_ref(jnp.concatenate([z, zh], axis=-1), p["wred"]) + p["bred"]
    z = z.reshape(B, H, W, C)
    if shift > 0:
        z = jnp.roll(z, shift=(-shift, -shift), axis=(1, 2))
    xw = window_partition(z, ws).reshape(-1, N, C)
    if shift > 0:
        mask_full = jnp.tile(p["attn_mask"], (B, 1, 1))
    else:
        mask_full = jnp.zeros((xw.shape[0], N, N), F32)
    aw = window_attention_ref(xw, mask_full, p, num_heads)
    aw = aw.reshape(-1, ws, ws, C)
    z = window_reverse(aw, ws, H, W)
    if shift > 0:
        z = jnp.roll(z, shift=(shift, shift), axis=(1, 2))
    x1 = shortcut + z.reshape(B, L, C)
    y = _ln_ref(x1, p["g2"], p["b2"])
    y = _gelu_ref(_mm_ref(y, p["w1"]) + p["b1m"])
    y = _mm_ref(y, p["w2"]) + p["b2m"]
    return x1 + y


def swin_blocks_forward_ref(blocks, xt, hx, input_resolution, num_heads):
    outputs = []
    for i, p in enumerate(blocks):
        if i == 0:
            x = swin_block_forward_ref(p, xt, hx, input_resolution, num_heads)
        elif i % 2 == 0:
            x = swin_block_forward_ref(p, outputs[-1], xt, input_resolution, num_heads)
        else:
            x = swin_block_forward_ref(p, outputs[-1], None, input_resolution, num_heads)
        outputs.append(x)
    return outputs[-1]


# ------------------------------ parameter init -------------------------------

def _linear_init(key, fan_in, fan_out):
    kw, kb = jax.random.split(key)
    bound = 1.0 / (fan_in ** 0.5)
    w = jax.random.uniform(kw, (fan_in, fan_out), F32, minval=-bound, maxval=bound)
    b = jax.random.uniform(kb, (fan_out,), F32, minval=-bound, maxval=bound)
    return w, b


def _relative_position_index(ws):
    coords = np.stack(np.meshgrid(np.arange(ws), np.arange(ws), indexing="ij"))
    flat = coords.reshape(2, -1)
    rel = (flat[:, :, None] - flat[:, None, :]).transpose(1, 2, 0).astype(np.int32)
    rel[:, :, 0] += ws - 1
    rel[:, :, 1] += ws - 1
    rel[:, :, 0] *= 2 * ws - 1
    return jnp.asarray(rel.sum(-1))


def _attn_mask(H, W, ws, shift):
    if shift == 0:
        return None
    img = np.zeros((1, H, W, 1), np.float32)
    cnt = 0
    for hs in (slice(0, -ws), slice(-ws, -shift), slice(-shift, None)):
        for wsl in (slice(0, -ws), slice(-ws, -shift), slice(-shift, None)):
            img[:, hs, wsl, :] = cnt
            cnt += 1
    m = img.reshape(1, H // ws, ws, W // ws, ws, 1)
    m = m.transpose(0, 1, 3, 2, 4, 5).reshape(-1, ws * ws)
    am = m[:, None, :] - m[:, :, None]
    return jnp.asarray(np.where(am != 0, -100.0, 0.0).astype(np.float32))


def build_swin_blocks(key, dim, input_resolution, depth, num_heads, window_size,
                      mlp_ratio=4.0):
    hidden = int(dim * mlp_ratio)
    H, W = input_resolution
    blocks = []
    for i in range(depth):
        shift = 0 if i % 2 == 0 else window_size // 2
        ws = window_size
        if min(input_resolution) <= ws:   # mirror the PyTorch constructor clamp
            shift, ws = 0, min(input_resolution)
        N = ws * ws
        ks = jax.random.split(jax.random.fold_in(key, i), 11)
        wqkv, bqkv = _linear_init(ks[0], dim, 3 * dim)
        wproj, bproj = _linear_init(ks[1], dim, dim)
        w1, b1m = _linear_init(ks[2], dim, hidden)
        w2, b2m = _linear_init(ks[3], hidden, dim)
        wred, bred = _linear_init(ks[4], 2 * dim, dim)
        g1 = 1.0 + 0.1 * jax.random.normal(ks[5], (dim,), F32)
        b1 = 0.1 * jax.random.normal(ks[6], (dim,), F32)
        g2 = 1.0 + 0.1 * jax.random.normal(ks[7], (dim,), F32)
        b2 = 0.1 * jax.random.normal(ks[8], (dim,), F32)
        rpb_table = 0.02 * jax.random.normal(
            ks[9], ((2 * ws - 1) * (2 * ws - 1), num_heads), F32)
        rp_index = _relative_position_index(ws)
        rel_bias = rpb_table[rp_index.reshape(-1)]
        rel_bias = rel_bias.reshape(N, N, num_heads).transpose(2, 0, 1)
        blocks.append(dict(
            window_size=ws, shift_size=shift,
            g1=g1, b1=b1, g2=g2, b2=b2,
            wqkv=wqkv, bqkv=bqkv, wproj=wproj, bproj=bproj,
            w1=w1, b1m=b1m, w2=w2, b2m=b2m, wred=wred, bred=bred,
            rpb_table=rpb_table, rp_index=rp_index,
            attn_mask=_attn_mask(H, W, ws, shift),
            # hoisted / precomputed constants for the Pallas path:
            g1_r=g1.reshape(1, dim), b1_r=b1.reshape(1, dim),
            g2_r=g2.reshape(1, dim), b2_r=b2.reshape(1, dim),
            wqkv_bf16=wqkv.astype(BF16), bqkv_r=bqkv.reshape(1, 3 * dim),
            wproj_bf16=wproj.astype(BF16), bproj_r=bproj.reshape(1, dim),
            w1_bf16=w1.astype(BF16), b1m_r=b1m.reshape(1, hidden),
            w2_bf16=w2.astype(BF16), b2m_r=b2m.reshape(1, dim),
            wred_bf16=wred.astype(BF16), bred_r=bred.reshape(1, dim),
            rel_bias=rel_bias,
        ))
    return blocks


# ------------------------------------ main ------------------------------------

if __name__ == "__main__":
    B = 2
    H = W = 8
    dim = 128          # lane-dense channel dim
    num_heads = 4
    window_size = 4    # N = 16 tokens per window
    depth = 2          # block 0: no shift (+hx fusion), block 1: shifted windows
    mlp_ratio = 4.0
    L = H * W

    key = jax.random.PRNGKey(0)
    blocks = build_swin_blocks(key, dim, (H, W), depth, num_heads, window_size,
                               mlp_ratio)
    kx, kh = jax.random.split(jax.random.fold_in(key, 1000))
    xt = jax.random.normal(kx, (B, L, dim), F32)
    hx = jax.random.normal(kh, (B, L, dim), F32)

    out = swin_blocks_forward_pallas(blocks, xt, hx, (H, W), num_heads)
    out = jax.block_until_ready(out)

    ref = swin_blocks_forward_ref(blocks, xt, hx, (H, W), num_heads)
    assert out.shape == (B, L, dim)
    err = float(jnp.max(jnp.abs(out - ref)))
    assert err < 3e-2, f"max abs err {err}"
    print("KERNEL_OK")
</pallas_src>

<mosaic_0001>
module attributes {stable_mosaic.version = 11 : i64} {
  func.func @_ln_red_kernel(%arg0: i32, %arg1: memref<64x128xf32, #tpu.memory_space<vmem>>, %arg2: memref<64x128xf32, #tpu.memory_space<vmem>>, %arg3: memref<1x128xf32, #tpu.memory_space<vmem>>, %arg4: memref<1x128xf32, #tpu.memory_space<vmem>>, %arg5: memref<256x128xbf16, #tpu.memory_space<vmem>>, %arg6: memref<1x128xf32, #tpu.memory_space<vmem>>, %arg7: memref<64x128xbf16, #tpu.memory_space<vmem>>) attributes {dimension_semantics = [#tpu.dimension_semantics<parallel>], iteration_bounds = array<i64: 2>, scalar_prefetch = 0 : i64, scratch_operands = 0 : i64, tpu.core_type = #tpu.core_type<tc>, window_params = [{transform_indices = @transform_0, window_bounds = array<i64: 64, 128>}, {transform_indices = @transform_1, window_bounds = array<i64: 64, 128>}, {pipeline_mode = #tpu.pipeline_mode<synchronous>, transform_indices = @transform_2, window_bounds = array<i64: 1, 128>}, {pipeline_mode = #tpu.pipeline_mode<synchronous>, transform_indices = @transform_3, window_bounds = array<i64: 1, 128>}, {pipeline_mode = #tpu.pipeline_mode<synchronous>, transform_indices = @transform_4, window_bounds = array<i64: 256, 128>}, {pipeline_mode = #tpu.pipeline_mode<synchronous>, transform_indices = @transform_5, window_bounds = array<i64: 1, 128>}, {transform_indices = @transform_6, window_bounds = array<i64: 64, 128>}]} {
    %c0 = arith.constant 0 : index
    %c0_0 = arith.constant 0 : index
    %0 = vector.load %arg1[%c0, %c0_0] : memref<64x128xf32, #tpu.memory_space<vmem>>, vector<64x128xf32>
    %cst = arith.constant dense<0.000000e+00> : vector<64xf32>
    %1 = vector.multi_reduction <add>, %0, %cst [1] : vector<64x128xf32> to vector<64xf32>
    %2 = vector.shape_cast %1 : vector<64xf32> to vector<64x1xf32>
    %cst_1 = arith.constant 1.280000e+02 : f32
    %3 = vector.broadcast %cst_1 : f32 to vector<64x1xf32>
    %4 = arith.divf %2, %3 : vector<64x1xf32>
    %5 = vector.broadcast %4 : vector<64x1xf32> to vector<64x128xf32>
    %6 = arith.subf %0, %5 : vector<64x128xf32>
    %7 = arith.mulf %6, %6 : vector<64x128xf32>
    %cst_2 = arith.constant dense<0.000000e+00> : vector<64xf32>
    %8 = vector.multi_reduction <add>, %7, %cst_2 [1] : vector<64x128xf32> to vector<64xf32>
    %9 = vector.shape_cast %8 : vector<64xf32> to vector<64x1xf32>
    %cst_3 = arith.constant 1.280000e+02 : f32
    %10 = vector.broadcast %cst_3 : f32 to vector<64x1xf32>
    %11 = arith.divf %9, %10 : vector<64x1xf32>
    %cst_4 = arith.constant 9.99999974E-6 : f32
    %12 = vector.broadcast %cst_4 : f32 to vector<64x1xf32>
    %13 = arith.addf %11, %12 : vector<64x1xf32>
    %14 = math.rsqrt %13 : vector<64x1xf32>
    %15 = vector.broadcast %14 : vector<64x1xf32> to vector<64x128xf32>
    %16 = arith.mulf %6, %15 : vector<64x128xf32>
    %c0_5 = arith.constant 0 : index
    %c0_6 = arith.constant 0 : index
    %17 = vector.load %arg3[%c0_5, %c0_6] : memref<1x128xf32, #tpu.memory_space<vmem>>, vector<1x128xf32>
    %18 = vector.broadcast %17 : vector<1x128xf32> to vector<64x128xf32>
    %19 = arith.mulf %16, %18 : vector<64x128xf32>
    %c0_7 = arith.constant 0 : index
    %c0_8 = arith.constant 0 : index
    %20 = vector.load %arg4[%c0_7, %c0_8] : memref<1x128xf32, #tpu.memory_space<vmem>>, vector<1x128xf32>
    %21 = vector.broadcast %20 : vector<1x128xf32> to vector<64x128xf32>
    %22 = arith.addf %19, %21 : vector<64x128xf32>
    %23 = arith.truncf %22 : vector<64x128xf32> to vector<64x128xbf16>
    %c0_9 = arith.constant 0 : index
    %c0_10 = arith.constant 0 : index
    %24 = vector.load %arg2[%c0_9, %c0_10] : memref<64x128xf32, #tpu.memory_space<vmem>>, vector<64x128xf32>
    %cst_11 = arith.constant dense<0.000000e+00> : vector<64xf32>
    %25 = vector.multi_reduction <add>, %24, %cst_11 [1] : vector<64x128xf32> to vector<64xf32>
    %26 = vector.shape_cast %25 : vector<64xf32> to vector<64x1xf32>
    %cst_12 = arith.constant 1.280000e+02 : f32
    %27 = vector.broadcast %cst_12 : f32 to vector<64x1xf32>
    %28 = arith.divf %26, %27 : vector<64x1xf32>
    %29 = vector.broadcast %28 : vector<64x1xf32> to vector<64x128xf32>
    %30 = arith.subf %24, %29 : vector<64x128xf32>
    %31 = arith.mulf %30, %30 : vector<64x128xf32>
    %cst_13 = arith.constant dense<0.000000e+00> : vector<64xf32>
    %32 = vector.multi_reduction <add>, %31, %cst_13 [1] : vector<64x128xf32> to vector<64xf32>
    %33 = vector.shape_cast %32 : vector<64xf32> to vector<64x1xf32>
    %cst_14 = arith.constant 1.280000e+02 : f32
    %34 = vector.broadcast %cst_14 : f32 to vector<64x1xf32>
    %35 = arith.divf %33, %34 : vector<64x1xf32>
    %cst_15 = arith.constant 9.99999974E-6 : f32
    %36 = vector.broadcast %cst_15 : f32 to vector<64x1xf32>
    %37 = arith.addf %35, %36 : vector<64x1xf32>
    %38 = math.rsqrt %37 : vector<64x1xf32>
    %39 = vector.broadcast %38 : vector<64x1xf32> to vector<64x128xf32>
    %40 = arith.mulf %30, %39 : vector<64x128xf32>
    %c0_16 = arith.constant 0 : index
    %c0_17 = arith.constant 0 : index
    %41 = vector.load %arg3[%c0_16, %c0_17] : memref<1x128xf32, #tpu.memory_space<vmem>>, vector<1x128xf32>
    %42 = vector.broadcast %41 : vector<1x128xf32> to vector<64x128xf32>
    %43 = arith.mulf %40, %42 : vector<64x128xf32>
    %c0_18 = arith.constant 0 : index
    %c0_19 = arith.constant 0 : index
    %44 = vector.load %arg4[%c0_18, %c0_19] : memref<1x128xf32, #tpu.memory_space<vmem>>, vector<1x128xf32>
    %45 = vector.broadcast %44 : vector<1x128xf32> to vector<64x128xf32>
    %46 = arith.addf %43, %45 : vector<64x128xf32>
    %47 = arith.truncf %46 : vector<64x128xf32> to vector<64x128xbf16>
    %48 = tpu.concatenate %23, %47 in 1 : vector<64x128xbf16>, vector<64x128xbf16> -> vector<64x256xbf16>
    %c0_20 = arith.constant 0 : index
    %c0_21 = arith.constant 0 : index
    %49 = vector.load %arg5[%c0_20, %c0_21] : memref<256x128xbf16, #tpu.memory_space<vmem>>, vector<256x128xbf16>
    %cst_22 = arith.constant dense<0.000000e+00> : vector<64x128xf32>
    %50 = tpu.matmul %48, %49, %cst_22 {dimension_numbers = #tpu.dot_dimension_numbers<[1], [0], [0], [1], [0, 0, 1, 1], [], []>} : vector<64x256xbf16>, vector<256x128xbf16>, vector<64x128xf32> -> vector<64x128xf32>
    %c0_23 = arith.constant 0 : index
    %c0_24 = arith.constant 0 : index
    %51 = vector.load %arg6[%c0_23, %c0_24] : memref<1x128xf32, #tpu.memory_space<vmem>>, vector<1x128xf32>
    %52 = vector.broadcast %51 : vector<1x128xf32> to vector<64x128xf32>
    %53 = arith.addf %50, %52 : vector<64x128xf32>
    %54 = arith.truncf %53 : vector<64x128xf32> to vector<64x128xbf16>
    %c0_25 = arith.constant 0 : index
    %c0_26 = arith.constant 0 : index
    %55 = vector.load %arg7[%c0_25, %c0_26] : memref<64x128xbf16, #tpu.memory_space<vmem>>, vector<64x128xbf16>
    tpu.vector_store %arg7[%c0_25, %c0_26], %54 {strides = array<i32>} : memref<64x128xbf16, #tpu.memory_space<vmem>>, vector<64x128xbf16>,
    return
  }
  func.func @transform_0(%arg0: i32) -> (i32, i32) {
    %c0_i32 = arith.constant 0 : i32
    %c0_i32_0 = arith.constant 0 : i32
    return %arg0, %c0_i32 : i32, i32
  }
  func.func @transform_1(%arg0: i32) -> (i32, i32) {
    %c0_i32 = arith.constant 0 : i32
    %c0_i32_0 = arith.constant 0 : i32
    return %arg0, %c0_i32 : i32, i32
  }
  func.func @transform_2(%arg0: i32) -> (i32, i32) {
    %c0_i32 = arith.constant 0 : i32
    %c0_i32_0 = arith.constant 0 : i32
    %c0_i32_1 = arith.constant 0 : i32
    return %c0_i32, %c0_i32_0 : i32, i32
  }
  func.func @transform_3(%arg0: i32) -> (i32, i32) {
    %c0_i32 = arith.constant 0 : i32
    %c0_i32_0 = arith.constant 0 : i32
    %c0_i32_1 = arith.constant 0 : i32
    return %c0_i32, %c0_i32_0 : i32, i32
  }
  func.func @transform_4(%arg0: i32) -> (i32, i32) {
    %c0_i32 = arith.constant 0 : i32
    %c0_i32_0 = arith.constant 0 : i32
    %c0_i32_1 = arith.constant 0 : i32
    return %c0_i32, %c0_i32_0 : i32, i32
  }
  func.func @transform_5(%arg0: i32) -> (i32, i32) {
    %c0_i32 = arith.constant 0 : i32
    %c0_i32_0 = arith.constant 0 : i32
    %c0_i32_1 = arith.constant 0 : i32
    return %c0_i32, %c0_i32_0 : i32, i32
  }
  func.func @transform_6(%arg0: i32) -> (i32, i32) {
    %c0_i32 = arith.constant 0 : i32
    %c0_i32_0 = arith.constant 0 : i32
    return %arg0, %c0_i32 : i32, i32
  }
}

</mosaic_0001>

<bundles_post_ra>
// kernel: tpu_custom_call.1
= control target key start
LH: loop header
LB: loop body
LE: loop exit
PB: predicated region body
PF: predicated region fallthrough
CT: control target
= control target key end

     0   :  { %s1810_s0 = inlined_call_operand.hbm [shape: f32[128,128], index: 0, kind: input, shape index: {}]   ;;  %s1811_s1 = inlined_call_operand.hbm [shape: f32[128,128], index: 1, kind: input, shape index: {}]   ;;  %s1812_s2 = inlined_call_operand.vmem [shape: f32[1,128], index: 2, kind: input, shape index: {}]   ;;  %s1813_s3 = inlined_call_operand.vmem [shape: f32[1,128], index: 3, kind: input, shape index: {}]   ;;  %s1814_s4 = inlined_call_operand.hbm [shape: bf16[256,128], index: 4, kind: input, shape index: {}]   ;;  %s1815_s5 = inlined_call_operand.vmem [shape: f32[1,128], index: 5, kind: input, shape index: {}]   ;;  %s1816_s6 = inlined_call_operand.hbm [shape: bf16[128,128], index: 6, kind: output, shape index: {}]  }
   0x1   :  { %1820 = sst [smem:[#allocation14_spill]] %s1810_s0 }
   0x2   :  { %1821 = sst [smem:[#allocation15_spill]] %s1814_s4 }
   0x3   :  { %11 = vsyncpa [#allocation3], 0 }
   0x4   :  { %13 = vsyncpa [#allocation3 + $0x1], 0 }
   0x5   :  { %14 = vsyncpa [#allocation6], 0 }
   0x6   :  { %16 = vsyncpa [#allocation6 + $0x1], 0 }
   0x7   :  { %17 = vsyncpa [#allocation4], 0 }
   0x8   :  { %19 = vsyncpa [#allocation4 + $0x1], 0  ;;  %s1396_s21 = smov 0   ;;  %s1398_s22 = smov 0  }
   0x9   :  { %s1400_s23 = smov 0   ;;  %s1402_s24 = smov 0  }
   0xa LB: > { %s1417_s25 = sadd.s32 4294967295, %s1349_s24   ;;  %s934_s26 = sadd.s32 4294967294, %s1349_s24   ;;  %s1349_s24 = sphi %s1402_s24, %s1842_s24   ;;  %s1345_s23 = sphi %s1400_s23, %s1841_s23   ;;  %s1341_s22 = sphi %s1398_s22, %s1840_s22   ;;  %s1337_s21 = sphi %s1396_s21, %s1839_s21  }
   0xb   : > { %p45_p0 = scmp.ne.s32.totalorder %s1341_s22, %s1337_s21  ;;  %p1817_p1 = scmp.eq.s32.totalorder %s1417_s25, 0 }
   0xc   : > { %p185_p3 = scmp.eq.s32.totalorder %s934_s26, 1  ;;  %p935_p5 = scmp.ge.s32.totalorder %s1349_s24, 1 }
   0xd   : > { %p1426_p4 = por %p1817_p1, %p45_p0  ;;  %p192_p7 = scmp.lt.s32.totalorder %s1349_s24, 3 }
   0xe   : > { %p1431_p6 = por %p185_p3, %p45_p0  ;;  %s1351_s30 = smov [#allocation7]  }
   0xf   : > { %s1822_s27 = scalar_select %p1426_p4, 1, 0 }
  0x10   : > { %s1823_s28 = scalar_select %p1431_p6, 1, 0 }
  0x11   : > { %p1436_p8 = pnand %p935_p5, %p192_p7  ;;  %s210_s7 = sshll.u32 %s1351_s30, 4  ;;  %s1440_s7 = int_to_ptr.vmem [resolvable:$true] %s210_s7 }
  0x12   : > { %s1452_s9 = sadd.s32 1, %s1349_s24   ;;  %s32_s10 = sadd.s32 1, %s1345_s23 }
  0x13   : > { %s1824_s29 = scalar_select %p1436_p8, 1, 0 }
  0x14   : > { %p1081_p9 = pneg %p1436_p8  ;;  %s29_s11 = ssub.s32 %s1349_s24, %s1452_s9 }
  0x15   : > { %s1826_s4 = sld [smem:[#allocation15_spill]] }
  0x16   : > { %p1447_p11 = pnand %p1081_p9, %p1817_p1 }
  0x18   : > { %p1189_p13 = pneg %p1447_p11 }
  0x1b   : > { %s1187_s14 = scalar_lea.hbm %s1826_s4, 2048 }
  0x1c   : > { %p1188_p12 = scmp.ne.s32.totalorder %s1826_s4, %s1187_s14  ;;  %p1194_p5 = scmp.lt.u32.totalorder %s1187_s14, %s1826_s4 }
  0x1e   : > { %p1190_p0 = pnand %p1189_p13, %p1188_p12 }
  0x20   : > { %p1191_p3 = pneg %p1190_p0 }
  0x22   : > { %p1196_p7 = pnand %p1194_p5, %p1191_p3 }
  0x24   : > { %1199 = shalt.err (!%p1196_p7)
}
  0x25   : > { %s1200_s19 = scalar_lea.vmem %s1440_s7, 2048  ;;  %p1208_p2 = scmp.lt.s32.totalorder %s1440_s7, %s1440_s7 }
  0x26   : > { %p1201_p9 = scmp.ne.s32.totalorder %s1440_s7, %s1200_s19  ;;  %p1209_p6 = scmp.lt.s32.totalorder %s1200_s19, %s1200_s19 }
  0x28   : > { %p1203_p10 = pnand %p1201_p9, %p1189_p13  ;;  %p1210_p4 = por %p1209_p6, %p1208_p2 }
  0x2a   : > { %p1204_p1 = pneg %p1203_p10 }
  0x2c   : > { %p1211_p8 = pnand %p1210_p4, %p1204_p1 }
  0x2e   : > { %1214 = shalt.err (!%p1211_p8)
}
  0x2f   : > { %s1352_s20 = smov 64   ;;  %s1353_s26 = smov 4  }
  0x30   : > { %1084 = dma.hbm_to_vmem [thread:$0]  (!%p1447_p11), %s1826_s4, 2048, %s1440_s7, [#allocation6], %s1352_s20, %s1352_s20, %s1353_s26  }
  0x31   : > { %p30_p1 = scmp.eq.s32.totalorder %s29_s11, 0  ;;  %p39_p2 = scmp.ne.s32.totalorder %s1345_s23, %s1341_s22 }
  0x32   : > { %p40_p4 = scmp.eq.s32.totalorder %s1349_s24, 0  ;;  %p1097_p6 = scmp.lt.s32.totalorder %s1349_s24, 2 }
  0x33   : > { %s1483_s13 = scalar_select %p30_p1, %s1345_s23, %s32_s10  }
  0x34   : > { %p41_p8 = por %p40_p4, %p39_p2  ;;  %p1828_p10 = scmp.eq.s32.totalorder %s1417_s25, 1 }
  0x35   : > { %1827 = sst [smem:[#allocation13_spill]] %s1483_s13  ;;  %s227_s15 = sand.u32 1, %s1345_s23  }
  0x36   : > { %p1487_p12 = por %p1828_p10, %p39_p2  ;;  %s981_s16 = sshll.u32 %s1349_s24, 10 }
  0x37   : > { %s1493_s17 = sshll.u32 %s227_s15, 6  ;;  %s1830_s0 = sld [smem:[#allocation14_spill]] }
  0x38   : > { %s231_s10 = scalar_lea.vmem [#allocation2], %s1493_s17  ;;  %p1503_p11 = pnand %p1097_p6, %p41_p8 }
  0x39   : > { %s238_s11 = sshll.u32 %s231_s10, 4  ;;  %s1509_s20 = scalar_lea.sflag [#allocation3], %s227_s15  ;;  %s1507_s11 = int_to_ptr.vmem [resolvable:$true] %s238_s11 }
  0x3a   : > { %p1217_p0 = pneg %p1503_p11 }
  0x3d   : > { %s1500_s7 = scalar_lea.hbm %s1830_s0, %s981_s16  ;;  %s1220_s8 = scalar_lea.hbm %s1830_s0, 2048 }
  0x3e   : > { %s1215_s26 = scalar_lea.hbm %s1500_s7, 1024  ;;  %p1221_p7 = scmp.lt.u32.totalorder %s1500_s7, %s1830_s0 }
  0x3f   : > { %p1216_p13 = scmp.ne.s32.totalorder %s1500_s7, %s1215_s26  ;;  %p1222_p9 = scmp.lt.u32.totalorder %s1220_s8, %s1215_s26 }
  0x40   : > { %p1224_p2 = scmp.lt.u32.totalorder %s1215_s26, %s1500_s7 }
  0x41   : > { %p1218_p3 = pnand %p1217_p0, %p1216_p13  ;;  %p1223_p1 = por %p1222_p9, %p1221_p7 }
  0x43   : > { %p1219_p5 = pneg %p1218_p3  ;;  %p1225_p4 = por %p1224_p2, %p1223_p1 }
  0x45   : > { %p1226_p6 = pnand %p1225_p4, %p1219_p5 }
  0x47   : > { %1229 = shalt.err (!%p1226_p6)
}
  0x48   : > { %s1230_s15 = scalar_lea.vmem %s1507_s11, 1024  ;;  %s1354_s30 = smov [#allocation2]  }
  0x49   : > { %p1231_p8 = scmp.ne.s32.totalorder %s1507_s11, %s1230_s15  ;;  %s1235_s12 = sshll.u32 %s1354_s30, 4  ;;  %s1236_s12 = int_to_ptr.vmem [resolvable:$false] %s1235_s12 }
  0x4a   : > { %s1237_s18 = scalar_lea.vmem %s1236_s12, 2048  ;;  %p1238_p3 = scmp.lt.s32.totalorder %s1507_s11, %s1236_s12 }
  0x4b   : > { %p1233_p10 = pnand %p1231_p8, %p1217_p0  ;;  %p1239_p7 = scmp.lt.s32.totalorder %s1237_s18, %s1230_s15 }
  0x4d   : > { %p1234_p13 = pneg %p1233_p10  ;;  %p1240_p9 = por %p1239_p7, %p1238_p3 }
  0x4f   : > { %p1241_p1 = pnand %p1240_p9, %p1234_p13 }
  0x51   : > { %1244 = shalt.err (!%p1241_p1)
}
  0x52   : > { %s1355_s26 = smov 128   ;;  %s1356_s8 = smov 8  }
  0x53   : > { %1088 = dma.hbm_to_vmem [thread:$0]  (!%p1503_p11), %s1500_s7, 1024, %s1507_s11, %s1509_s20, %s1355_s26, %s1355_s26, %s1356_s8  }
  0x54   : > { %s1545_s30 = scalar_lea.hbm %s1811_s1, %s981_s16  ;;  %s252_s12 = scalar_lea.vmem [#allocation5], %s1493_s17 }
  0x55   : > { %s259_s18 = sshll.u32 %s252_s12, 4  ;;  %s248_s0 = sand.u32 1, %s1349_s24   ;;  %s1549_s18 = int_to_ptr.vmem [resolvable:$true] %s259_s18 }
  0x56   : > { %s1551_s4 = scalar_lea.sflag [#allocation6], %s248_s0  ;;  %s1245_s13 = scalar_lea.hbm %s1545_s30, 1024 }
  0x57   : > { %p1246_p5 = scmp.ne.s32.totalorder %s1545_s30, %s1245_s13  ;;  %s1250_s11 = scalar_lea.hbm %s1811_s1, 2048 }
  0x58   : > { %p1251_p6 = scmp.lt.u32.totalorder %s1545_s30, %s1811_s1  ;;  %p1252_p8 = scmp.lt.u32.totalorder %s1250_s11, %s1245_s13 }
  0x59   : > { %p1248_p2 = pnand %p1246_p5, %p1217_p0  ;;  %p1254_p13 = scmp.lt.u32.totalorder %s1245_s13, %s1545_s30 }
  0x5a   : > { %p1253_p10 = por %p1252_p8, %p1251_p6 }
  0x5b   : > { %p1249_p4 = pneg %p1248_p2 }
  0x5c   : > { %p1255_p3 = por %p1254_p13, %p1253_p10 }
  0x5e   : > { %p1256_p7 = pnand %p1255_p3, %p1249_p4 }
  0x60   : > { %1259 = shalt.err (!%p1256_p7)
}
  0x61   : > { %s1260_s0 = scalar_lea.vmem %s1549_s18, 1024  ;;  %s1357_s17 = smov [#allocation5]  }
  0x62   : > { %p1261_p9 = scmp.ne.s32.totalorder %s1549_s18, %s1260_s0  ;;  %s1265_s15 = sshll.u32 %s1357_s17, 4  ;;  %s1266_s15 = int_to_ptr.vmem [resolvable:$false] %s1265_s15 }
  0x63   : > { %s1267_s12 = scalar_lea.vmem %s1266_s15, 2048  ;;  %p1268_p2 = scmp.lt.s32.totalorder %s1549_s18, %s1266_s15 }
  0x64   : > { %p1263_p1 = pnand %p1261_p9, %p1217_p0  ;;  %p1269_p6 = scmp.lt.s32.totalorder %s1267_s12, %s1260_s0 }
  0x66   : > { %p1264_p5 = pneg %p1263_p1  ;;  %p1270_p8 = por %p1269_p6, %p1268_p2 }
  0x68   : > { %p1271_p10 = pnand %p1270_p8, %p1264_p5 }
  0x6a   : > { %1274 = shalt.err (!%p1271_p10)
}
  0x6b   : > { %1091 = dma.hbm_to_vmem [thread:$0]  (!%p1503_p11), %s1545_s30, 1024, %s1549_s18, %s1551_s4, %s1355_s26, %s1355_s26, %s1356_s8  }
  0x6c   : > { %p1832_p0 = scmp.ne.s32.totalorder %s1824_s29, 0 }
  0x6d   : > { %s1583_s13 = sand.u32 (!%p1832_p0), 1, %s1341_s22   ;;  %p1833_p4 = scmp.ne.s32.totalorder (!%p1832_p0), %s1822_s27, 0 }
  0x6e   : > { %271 = sbr.rel (%p1832_p0) target bundleno = 706 (0x2c2), region = 44  ;;  %s945_s7 = sshll.u32 (!%p1832_p0), %s1583_s13, 6 }
  0x6f   : > { %s274_s16 = scalar_lea.sflag (!%p1832_p0), [#allocation3], %s1583_s13  ;;  %s1587_s11 = scalar_lea.vmem (!%p1832_p0), [#allocation2], %s945_s7 }
  0x75   : > { %1320 = dma.done.wait (%p1833_p4), %s274_s16, 1024  }
  0x76   : > { %1322 = vsyncadd (%p1833_p4), %s274_s16, 4294966272  ;;  %s282_s4 = sand.u32 1, %s1417_s25   ;;  %s286_s19 = scalar_lea.vmem [#allocation5], %s945_s7 }
  0x77   : > { %s283_s29 = scalar_lea.sflag [#allocation6], %s282_s4 }
  0x78   : > { %1324 = dma.done.wait (%p1833_p4), %s283_s29, 1024  }
  0x79   : > { %1326 = vsyncadd (%p1833_p4), %s283_s29, 4294966272  ;;  %p1834_p11 = scmp.eq.s32.totalorder %s1417_s25, 0 }
  0x7b   : > { %1328 = dma.done.wait (%p1834_p11), [#allocation6], 2048   ;;  %p1835_p13 = pmov %p1834_p11 }
  0x7c   : > { %v459_v0 = vld [vmem:[%s286_s19] sm:$0xff]  ;;  %v460_v2 = vld [vmem:[%s286_s19 + $0x8] sm:$0xff]  ;;  %v461_v8 = vld [vmem:[%s286_s19 + $0x10] sm:$0xff]  ;;  %s948_s10 = sshll.u32 %s1583_s13, 5  ;;  %s991_s15 = sshll.u32 %s1417_s25, 9 }
  0x7d   : > { %1330 = vsyncadd (%p1835_p13), [#allocation6], 4294965248  ;;  %v463_v1 = vld [vmem:[%s286_s19 + $0x20] sm:$0xff]  ;;  %467 = vadd.xlane.f32.xlu0 %v459_v0  ;;  %v464_v3 = vld [vmem:[%s286_s19 + $0x28] sm:$0xff]  ;;  %s323_s0 = scalar_lea.vmem [#allocation8], %s948_s10  ;;  %s1766_s16 = scalar_lea.hbm %s1816_s6, %s991_s15 }
  0x7e   : > { %475 = vadd.xlane.f32.xlu1 %v463_v1  ;;  %v328_v4 = vld [vmem:[%s1587_s11] sm:$0xff]  ;;  %v329_v5 = vld [vmem:[%s1587_s11 + $0x8] sm:$0xff]  ;;  %v462_v9 = vld [vmem:[%s286_s19 + $0x18] sm:$0xff]  ;;  %s829_s17 = sshll.u32 %s323_s0, 4  ;;  %s1358_s25 = smov [#allocation8]   ;;  %s1761_s17 = int_to_ptr.vmem [resolvable:$true] %s829_s17 }
  0x7f   : > { %v332_v6 = vld [vmem:[%s1587_s11 + $0x20] sm:$0xff]  ;;  %v333_v7 = vld [vmem:[%s1587_s11 + $0x28] sm:$0xff]  ;;  %v1606_v10 = vld [vmem:[%s286_s19 + $0x30] sm:$0xff]  ;;  %s1275_s4 = scalar_lea.vmem %s1761_s17, 512  ;;  %s1279_s29 = sshll.u32 %s1358_s25, 4  ;;  %s1280_s29 = int_to_ptr.vmem [resolvable:$false] %s1279_s29 }
  0x80   : > { %v1608_v11 = vld [vmem:[%s286_s19 + $0x38] sm:$0xff]  ;;  %v1613_v12 = vld [vmem:[%s1587_s11 + $0x10] sm:$0xff]  ;;  %v1139_v59 = vld [vmem:[#allocation7 + $0x40] sm:$0xff]   ;;  %p1276_p3 = scmp.ne.s32.totalorder %s1761_s17, %s1275_s4  ;;  %s1281_s19 = scalar_lea.vmem %s1280_s29, 1024 }
  0x81   : > { %469 = vadd.xlane.f32.xlu0 %v460_v2  ;;  %v1616_v13 = vld [vmem:[%s1587_s11 + $0x18] sm:$0xff]  ;;  %v1621_v14 = vld [vmem:[%s1587_s11 + $0x30] sm:$0xff]  ;;  %1015 = vmatprep.subr.bf16.mxu0 %v1139_v59  ;;  %p1282_p1 = scmp.lt.s32.totalorder %s1761_s17, %s1280_s29  ;;  %p1283_p5 = scmp.lt.s32.totalorder %s1281_s19, %s1275_s4 }
  0x82   : > { %477 = vadd.xlane.f32.xlu1 %v464_v3  ;;  %v1624_v15 = vld [vmem:[%s1587_s11 + $0x38] sm:$0xff]  ;;  %1055 = vmatprep.subr.bf16.mxu1 %v1139_v59  ;;  %s816_s11 = scalar_lea.sflag [#allocation4], %s1583_s13  ;;  %p1277_p7 = pnand %p1276_p3, %p1487_p12 }
  0x83   : > { %p1284_p2 = por %p1283_p5, %p1282_p1 }
  0x84   : > { %p1278_p9 = pneg %p1277_p7 }
  0x85   : > { %336 = vadd.xlane.f32.xlu0 %v328_v4 }
  0x86   : > { %338 = vadd.xlane.f32.xlu1 %v329_v5  ;;  %p1285_p6 = pnand %p1284_p2, %p1278_p9 }
  0x89   : > { %344 = vadd.xlane.f32.xlu0 %v332_v6 }
  0x8a   : > { %346 = vadd.xlane.f32.xlu1 %v333_v7 }
  0x8d   : > { %471 = vadd.xlane.f32.xlu0 %v461_v8 }
  0x8e   : > { %473 = vadd.xlane.f32.xlu1 %v462_v9 }
  0x91   : > { %479 = vadd.xlane.f32.xlu0 %v1606_v10 }
  0x92   : > { %481 = vadd.xlane.f32.xlu1 %v1608_v11 }
  0x95   : > { %340 = vadd.xlane.f32.xlu0 %v1613_v12 }
  0x96   : > { %342 = vadd.xlane.f32.xlu1 %v1616_v13 }
  0x99   : > { %348 = vadd.xlane.f32.xlu0 %v1621_v14 }
  0x9a   : > { %350 = vadd.xlane.f32.xlu1 %v1624_v15 }
 0x10a   : > { %v468_v16 = vpop.xlane.xlu0 %467 }
 0x10b   : > { %v476_v17 = vpop.xlane.xlu1 %475  ;;  %v483_v18 = vmul.f32 0.0078125, %v468_v16 }
 0x10c   : > { %v487_v19 = vmul.f32 0.0078125, %v476_v17 }
 0x10d   : > { %v1628_v20 = vsub.f32 %v459_v0, %v483_v18 }
 0x10e   : > { %v1630_v21 = vsub.f32 %v463_v1, %v487_v19  ;;  %v470_v22 = vpop.xlane.xlu0 %469  ;;  %v1140_v1 = vld [vmem:[#allocation7] sm:$0xff]  }
 0x10f   : > { %v478_v23 = vpop.xlane.xlu1 %477  ;;  %v484_v24 = vmul.f32 0.0078125, %v470_v22  ;;  %v499_v25 = vmul.f32 %v1628_v20, %v1628_v20  ;;  %1016 = vmatpush3.bf16.msra.mxu0 %v1140_v1  ;;  %1063 = vmatpush3.bf16.msra.mxu1 %v1140_v1  ;;  %v1143_v22 = vld [vmem:[#allocation7 + $0x50] sm:$0xff]  }
 0x110   : > { %v488_v26 = vmul.f32 0.0078125, %v478_v23  ;;  %v503_v29 = vmul.f32 %v1630_v21, %v1630_v21  ;;  %v1144_v23 = vld [vmem:[#allocation7 + $0x10] sm:$0xff]  }
 0x111   : > { %v1634_v27 = vsub.f32 %v460_v2, %v484_v24  ;;  %507 = vadd.xlane.f32.xlu0 %v499_v25  ;;  %v1145_v25 = vld [vmem:[#allocation7 + $0x58] sm:$0xff]  }
 0x112   : > { %v1636_v28 = vsub.f32 %v464_v3, %v488_v26  ;;  %v337_v30 = vpop.xlane.xlu0 %336  ;;  %v1147_v26 = vld [vmem:[#allocation7 + $0x60] sm:$0xff]  }
 0x113   : > { %v339_v31 = vpop.xlane.xlu1 %338  ;;  %v353_v32 = vmul.f32 0.0078125, %v337_v30  ;;  %v500_v33 = vmul.f32 %v1634_v27, %v1634_v27  ;;  %v1149_v30 = vld [vmem:[#allocation7 + $0x68] sm:$0xff]  }
 0x114   : > { %v354_v34 = vmul.f32 0.0078125, %v339_v31  ;;  %v504_v37 = vmul.f32 %v1636_v28, %v1636_v28  ;;  %v1150_v31 = vld [vmem:[#allocation7 + $0x28] sm:$0xff]  }
 0x115   : > { %v1642_v35 = vsub.f32 %v328_v4, %v353_v32  ;;  %509 = vadd.xlane.f32.xlu1 %v500_v33  ;;  %515 = vadd.xlane.f32.xlu0 %v503_v29  ;;  %v1148_v29 = vld [vmem:[#allocation7 + $0x20] sm:$0xff]   ;;  %v1151_v32 = vld [vmem:[#allocation7 + $0x70] sm:$0xff]  }
 0x116   : > { %v1644_v36 = vsub.f32 %v329_v5, %v354_v34  ;;  %v345_v38 = vpop.xlane.xlu0 %344  ;;  %v1152_v33 = vld [vmem:[#allocation7 + $0x30] sm:$0xff]   ;;  %v1153_v34 = vld [vmem:[#allocation7 + $0x78] sm:$0xff]  }
 0x117   : > { %v347_v39 = vpop.xlane.xlu1 %346  ;;  %v357_v40 = vmul.f32 0.0078125, %v345_v38  ;;  %v369_v41 = vmul.f32 %v1642_v35, %v1642_v35 }
 0x118   : > { %v358_v42 = vmul.f32 0.0078125, %v347_v39  ;;  %v370_v45 = vmul.f32 %v1644_v36, %v1644_v36 }
 0x119   : > { %v1650_v43 = vsub.f32 %v332_v6, %v357_v40  ;;  %517 = vadd.xlane.f32.xlu1 %v504_v37  ;;  %377 = vadd.xlane.f32.xlu0 %v369_v41  ;;  %v1154_v37 = vld [vmem:[#allocation7 + $0x38] sm:$0xff]  }
 0x11a   : > { %v1652_v44 = vsub.f32 %v333_v7, %v358_v42  ;;  %v472_v46 = vpop.xlane.xlu0 %471 }
 0x11b   : > { %v474_v47 = vpop.xlane.xlu1 %473  ;;  %v485_v48 = vmul.f32 0.0078125, %v472_v46  ;;  %v373_v49 = vmul.f32 %v1650_v43, %v1650_v43 }
 0x11c   : > { %v486_v50 = vmul.f32 0.0078125, %v474_v47  ;;  %v374_v53 = vmul.f32 %v1652_v44, %v1652_v44 }
 0x11d   : > { %v1658_v51 = vsub.f32 %v461_v8, %v485_v48  ;;  %379 = vadd.xlane.f32.xlu1 %v370_v45  ;;  %385 = vadd.xlane.f32.xlu0 %v373_v49  ;;  %v1141_v8 = vld [vmem:[#allocation7 + $0x48] sm:$0xff]  }
 0x11e   : > { %v1660_v52 = vsub.f32 %v462_v9, %v486_v50  ;;  %v480_v54 = vpop.xlane.xlu0 %479  ;;  %1017 = vmatprep.subr.bf16.mxu0 %v1141_v8  ;;  %1056 = vmatprep.subr.bf16.mxu1 %v1141_v8 }
 0x11f   : > { %v482_v55 = vpop.xlane.xlu1 %481  ;;  %v489_v56 = vmul.f32 0.0078125, %v480_v54  ;;  %v501_v57 = vmul.f32 %v1658_v51, %v1658_v51 }
 0x120   : > { %v490_v58 = vmul.f32 0.0078125, %v482_v55  ;;  %v502_v62 = vmul.f32 %v1660_v52, %v1660_v52 }
 0x121   : > { %v1667_v60 = vsub.f32 %v1606_v10, %v489_v56  ;;  %387 = vadd.xlane.f32.xlu1 %v374_v53  ;;  %511 = vadd.xlane.f32.xlu0 %v501_v57 }
 0x122   : > { %v1670_v61 = vsub.f32 %v1608_v11, %v490_v58  ;;  %v341_v63 = vpop.xlane.xlu0 %340  ;;  %v1142_v11 = vld [vmem:[#allocation7 + $0x8] sm:$0xff]  }
 0x123   : > { %v343_v0 = vpop.xlane.xlu1 %342  ;;  %v355_v2 = vmul.f32 0.0078125, %v341_v63  ;;  %v505_v3 = vmul.f32 %v1667_v60, %v1667_v60  ;;  %1018 = vmatpush3.bf16.msra.mxu0 %v1142_v11  ;;  %1064 = vmatpush3.bf16.msra.mxu1 %v1142_v11 }
 0x124   : > { %v356_v4 = vmul.f32 0.0078125, %v343_v0  ;;  %v506_v7 = vmul.f32 %v1670_v61, %v1670_v61  ;;  %1019 = vmatprep.subr.bf16.mxu0 %v1143_v22  ;;  %1057 = vmatprep.subr.bf16.mxu1 %v1143_v22 }
 0x125   : > { %v1677_v5 = vsub.f32 %v1613_v12, %v355_v2  ;;  %513 = vadd.xlane.f32.xlu1 %v502_v62  ;;  %519 = vadd.xlane.f32.xlu0 %v505_v3 }
 0x126   : > { %v1680_v6 = vsub.f32 %v1616_v13, %v356_v4  ;;  %v349_v9 = vpop.xlane.xlu0 %348 }
 0x127   : > { %v351_v10 = vpop.xlane.xlu1 %350  ;;  %v359_v16 = vmul.f32 0.0078125, %v349_v9  ;;  %v371_v17 = vmul.f32 %v1677_v5, %v1677_v5  ;;  %1020 = vmatpush3.bf16.msra.mxu0 %v1144_v23  ;;  %1065 = vmatpush3.bf16.msra.mxu1 %v1144_v23  ;;  %v1702_v9 = vld [vmem:[%s1812_s2] ss:$0 sm:$0xff] }
 0x128   : > { %v360_v18 = vmul.f32 0.0078125, %v351_v10  ;;  %v372_v19 = vmul.f32 %v1680_v6, %v1680_v6  ;;  %1021 = vmatprep.subr.bf16.mxu0 %v1145_v25  ;;  %1058 = vmatprep.subr.bf16.mxu1 %v1145_v25 }
 0x129   : > { %v1687_v12 = vsub.f32 %v1621_v14, %v359_v16  ;;  %521 = vadd.xlane.f32.xlu1 %v506_v7  ;;  %381 = vadd.xlane.f32.xlu0 %v371_v17 }
 0x12a   : > { %v1690_v13 = vsub.f32 %v1624_v15, %v360_v18  ;;  %v1146_v15 = vld [vmem:[#allocation7 + $0x18] sm:$0xff]  }
 0x12b   : > { %v375_v24 = vmul.f32 %v1687_v12, %v1687_v12  ;;  %1022 = vmatpush3.bf16.msra.mxu0 %v1146_v15  ;;  %1066 = vmatpush3.bf16.msra.mxu1 %v1146_v15 }
 0x12c   : > { %v376_v14 = vmul.f32 %v1690_v13, %v1690_v13  ;;  %1023 = vmatprep.subr.bf16.mxu0 %v1147_v26  ;;  %1059 = vmatprep.subr.bf16.mxu1 %v1147_v26 }
 0x12d   : > { %383 = vadd.xlane.f32.xlu1 %v372_v19  ;;  %389 = vadd.xlane.f32.xlu0 %v375_v24 }
 0x12f   : > { %1024 = vmatpush3.bf16.msra.mxu0 %v1148_v29  ;;  %1067 = vmatpush3.bf16.msra.mxu1 %v1148_v29 }
 0x130   : > { %1025 = vmatprep.subr.bf16.mxu0 %v1149_v30  ;;  %1060 = vmatprep.subr.bf16.mxu1 %v1149_v30 }
 0x131   : > { %391 = vadd.xlane.f32.xlu1 %v376_v14  ;;  %v1709_v14 = vld [vmem:[%s1813_s3] ss:$0 sm:$0xff] }
 0x133   : > { %1026 = vmatpush3.bf16.msra.mxu0 %v1150_v31  ;;  %1068 = vmatpush3.bf16.msra.mxu1 %v1150_v31 }
 0x134   : > { %1027 = vmatprep.subr.bf16.mxu0 %v1151_v32  ;;  %1061 = vmatprep.subr.bf16.mxu1 %v1151_v32 }
 0x137   : > { %1028 = vmatpush3.bf16.msra.mxu0 %v1152_v33  ;;  %1069 = vmatpush3.bf16.msra.mxu1 %v1152_v33 }
 0x138   : > { %1029 = vmatprep.subr.bf16.mxu0 %v1153_v34  ;;  %1062 = vmatprep.subr.bf16.mxu1 %v1153_v34 }
 0x13b   : > { %1030 = vmatpush3.bf16.msra.mxu0 %v1154_v37  ;;  %1070 = vmatpush3.bf16.msra.mxu1 %v1154_v37 }
 0x19e   : > { %v508_v38 = vpop.xlane.xlu0 %507 }
 0x19f   : > { %v523_v39 = vmul.f32 0.0078125, %v508_v38 }
 0x1a1   : > { %v531_v40 = vadd.f32 1e-05, %v523_v39 }
 0x1a2   : > { %v510_v41 = vpop.xlane.xlu1 %509  ;;  %v516_v42 = vpop.xlane.xlu0 %515 }
 0x1a3   : > { %1155 = vrsqrt.f32 %v531_v40  ;;  %v524_v45 = vmul.f32 0.0078125, %v510_v41  ;;  %v527_v46 = vmul.f32 0.0078125, %v516_v42 }
 0x1a5   : > { %v532_v47 = vadd.f32 1e-05, %v524_v45  ;;  %v535_v48 = vadd.f32 1e-05, %v527_v46 }
 0x1a6   : > { %v518_v49 = vpop.xlane.xlu1 %517  ;;  %v378_v50 = vpop.xlane.xlu0 %377 }
 0x1a7   : > { %1157 = vrsqrt.f32 %v532_v47  ;;  %v528_v53 = vmul.f32 0.0078125, %v518_v49  ;;  %v393_v54 = vmul.f32 0.0078125, %v378_v50 }
 0x1a8   : > { %1159 = vrsqrt.f32 %v535_v48 }
 0x1a9   : > { %v536_v55 = vadd.f32 1e-05, %v528_v53  ;;  %v401_v56 = vadd.f32 1e-05, %v393_v54 }
 0x1aa   : > { %v380_v57 = vpop.xlane.xlu1 %379  ;;  %v386_v58 = vpop.xlane.xlu0 %385 }
 0x1ab   : > { %1161 = vrsqrt.f32 %v536_v55  ;;  %v394_v59 = vmul.f32 0.0078125, %v380_v57  ;;  %v397_v62 = vmul.f32 0.0078125, %v386_v58 }
 0x1ac   : > { %1163 = vrsqrt.f32 %v401_v56 }
 0x1ad   : > { %v1156_v63 = vpop.eup %1155  ;;  %v402_v0 = vadd.f32 1e-05, %v394_v59  ;;  %v405_v1 = vadd.f32 1e-05, %v397_v62 }
 0x1ae   : > { %v388_v2 = vpop.xlane.xlu1 %387  ;;  %v512_v3 = vpop.xlane.xlu0 %511  ;;  %v547_v4 = vmul.f32 %v1156_v63, %v1628_v20 }
 0x1af   : > { %1165 = vrsqrt.f32 %v402_v0  ;;  %v398_v7 = vmul.f32 0.0078125, %v388_v2  ;;  %v525_v8 = vmul.f32 0.0078125, %v512_v3 }
 0x1b0   : > { %1167 = vrsqrt.f32 %v405_v1  ;;  %v555_v23 = vmul.f32 %v1702_v9, %v547_v4 }
 0x1b1   : > { %v1158_v10 = vpop.eup %1157  ;;  %v406_v11 = vadd.f32 1e-05, %v398_v7  ;;  %v533_v16 = vadd.f32 1e-05, %v525_v8 }
 0x1b2   : > { %v1160_v17 = vpop.eup %1159  ;;  %v514_v18 = vpop.xlane.xlu1 %513  ;;  %v548_v22 = vmul.f32 %v1158_v10, %v1634_v27  ;;  %v563_v33 = vadd.f32 %v1709_v14, %v555_v23 }
 0x1b3   : > { %v520_v19 = vpop.xlane.xlu0 %519  ;;  %1169 = vrsqrt.f32 %v406_v11  ;;  %v526_v20 = vmul.f32 0.0078125, %v514_v18  ;;  %v551_v25 = vmul.f32 %v1160_v17, %v1630_v21 }
 0x1b4   : > { %v529_v24 = vmul.f32 0.0078125, %v520_v19  ;;  %1171 = vrsqrt.f32 %v533_v16  ;;  %v556_v15 = vmul.f32 %v1702_v9, %v548_v22 }
 0x1b5   : > { %v1162_v26 = vpop.eup %1161  ;;  %v534_v29 = vadd.f32 1e-05, %v526_v20  ;;  %v559_v38 = vmul.f32 %v1702_v9, %v551_v25 }
 0x1b6   : > { %v537_v30 = vadd.f32 1e-05, %v529_v24  ;;  %v1164_v31 = vpop.eup %1163  ;;  %v522_v27 = vpop.xlane.xlu1 %521  ;;  %v564_v34 = vadd.f32 %v1709_v14, %v556_v15  ;;  %v552_v37 = vmul.f32 %v1162_v26, %v1636_v28 }
 0x1b7   : > { %v382_v32 = vpop.xlane.xlu0 %381  ;;  %1173 = vrsqrt.f32 %v534_v29  ;;  %v530_v39 = vmul.f32 0.0078125, %v522_v27  ;;  %v417_v42 = vmul.f32 %v1164_v31, %v1642_v35  ;;  %v567_v28 = vadd.f32 %v1709_v14, %v559_v38 }
 0x1b8   : > { %v395_v21 = vmul.f32 0.0078125, %v382_v32  ;;  %1175 = vrsqrt.f32 %v537_v30  ;;  %v571_v40 = vpack.c.bf16 %v564_v34, %v563_v33  ;;  %v560_v41 = vmul.f32 %v1702_v9, %v552_v37 }
 0x1b9   : > { %v1166_v45 = vpop.eup %1165  ;;  %v538_v46 = vadd.f32 1e-05, %v530_v39  ;;  %v432_v55 = vmul.f32 %v1702_v9, %v417_v42 }
 0x1ba   : > { %v403_v47 = vadd.f32 1e-05, %v395_v21  ;;  %v1168_v48 = vpop.eup %1167  ;;  %v384_v49 = vpop.xlane.xlu1 %383  ;;  %742 = vmatprep.mubr.bf16.mxu0 %v571_v40  ;;  %v568_v53 = vadd.f32 %v1709_v14, %v560_v41  ;;  %v418_v54 = vmul.f32 %v1166_v45, %v1644_v36 }
 0x1bb   : > { %v390_v50 = vpop.xlane.xlu0 %389  ;;  %1177 = vrsqrt.f32 %v538_v46  ;;  %v396_v56 = vmul.f32 0.0078125, %v384_v49  ;;  %v421_v35 = vmul.f32 %v1168_v48, %v1650_v43  ;;  %v447_v3 = vadd.f32 %v1709_v14, %v432_v55 }
 0x1bc   : > { %v399_v57 = vmul.f32 0.0078125, %v390_v50  ;;  %1179 = vrsqrt.f32 %v403_v47  ;;  %v573_v58 = vpack.c.bf16 %v568_v53, %v567_v28  ;;  %v433_v59 = vmul.f32 %v1702_v9, %v418_v54 }
 0x1bd   : > { %v1170_v62 = vpop.eup %1169  ;;  %v404_v63 = vadd.f32 1e-05, %v396_v56  ;;  %v436_v7 = vmul.f32 %v1702_v9, %v421_v35 }
 0x1be   : > { %v407_v0 = vadd.f32 1e-05, %v399_v57  ;;  %v1172_v1 = vpop.eup %1171  ;;  %v392_v2 = vpop.xlane.xlu1 %391  ;;  %758 = vmatprep.mubr.bf16.mxu1 %v573_v58  ;;  %v448_v36 = vadd.f32 %v1709_v14, %v433_v59  ;;  %v422_v4 = vmul.f32 %v1170_v62, %v1652_v44 }
 0x1bf   : > { %1181 = vrsqrt.f32 %v404_v63  ;;  %v400_v43 = vmul.f32 0.0078125, %v392_v2  ;;  %v549_v8 = vmul.f32 %v1172_v1, %v1658_v51  ;;  %v451_v19 = vadd.f32 %v1709_v14, %v436_v7 }
 0x1c0   : > { %1183 = vrsqrt.f32 %v407_v0  ;;  %v455_v10 = vpack.c.bf16 %v448_v36, %v447_v3  ;;  %v437_v11 = vmul.f32 %v1702_v9, %v422_v4 }
 0x1c1   : > { %v1174_v16 = vpop.eup %1173  ;;  %v408_v17 = vadd.f32 1e-05, %v400_v43  ;;  %v557_v23 = vmul.f32 %v1702_v9, %v549_v8 }
 0x1c2   : > { %v1176_v18 = vpop.eup %1175  ;;  %743 = vmatmul.mubr.bf16.vlgmr.msra.gmra.mrb[0].mxu0 %v455_v10  ;;  %v452_v22 = vadd.f32 %v1709_v14, %v437_v11  ;;  %v550_v44 = vmul.f32 %v1174_v16, %v1660_v52 }
 0x1c3   : > { %1185 = vrsqrt.f32 %v408_v17  ;;  %v553_v20 = vmul.f32 %v1176_v18, %v1667_v60  ;;  %v565_v26 = vadd.f32 %v1709_v14, %v557_v23 }
 0x1c4   : > { %v457_v51 = vpack.c.bf16 %v452_v22, %v451_v19  ;;  %v558_v24 = vmul.f32 %v1702_v9, %v550_v44 }
 0x1c5   : > { %v1178_v25 = vpop.eup %1177  ;;  %v561_v31 = vmul.f32 %v1702_v9, %v553_v20 }
 0x1c6   : > { %v1180_v15 = vpop.eup %1179  ;;  %759 = vmatmul.mubr.bf16.vlgmr.msra.gmra.mrb[0].mxu1 %v457_v51  ;;  %v566_v29 = vadd.f32 %v1709_v14, %v558_v24  ;;  %v554_v30 = vmul.f32 %v1178_v25, %v1670_v61 }
 0x1c7   : > { %v419_v52 = vmul.f32 %v1180_v15, %v1677_v5  ;;  %v569_v34 = vadd.f32 %v1709_v14, %v561_v31 }
 0x1c8   : > { %v572_v27 = vpack.c.bf16 %v566_v29, %v565_v26  ;;  %v562_v32 = vmul.f32 %v1702_v9, %v554_v30 }
 0x1c9   : > { %v1182_v60 = vpop.eup %1181  ;;  %v434_v39 = vmul.f32 %v1702_v9, %v419_v52 }
 0x1ca   : > { %v1184_v33 = vpop.eup %1183  ;;  %750 = vmatprep.mubr.bf16.mxu0 %v572_v27  ;;  %v570_v37 = vadd.f32 %v1709_v14, %v562_v32  ;;  %v420_v38 = vmul.f32 %v1182_v60, %v1680_v6 }
 0x1cb   : > { %v423_v61 = vmul.f32 %v1184_v33, %v1687_v12  ;;  %v449_v41 = vadd.f32 %v1709_v14, %v434_v39 }
 0x1cc   : > { %v574_v21 = vpack.c.bf16 %v570_v37, %v569_v34  ;;  %v435_v40 = vmul.f32 %v1702_v9, %v420_v38 }
 0x1cd   : > { %v1186_v5 = vpop.eup %1185  ;;  %v438_v46 = vmul.f32 %v1702_v9, %v423_v61 }
 0x1ce   : > { %766 = vmatprep.mubr.bf16.mxu1 %v574_v21  ;;  %v450_v42 = vadd.f32 %v1709_v14, %v435_v40  ;;  %v424_v45 = vmul.f32 %v1186_v5, %v1690_v13  ;;  %v951_v13 = vld [vmem:[%s1815_s5] ss:$0 sm:$0xff] }
 0x1cf   : > { %v453_v12 = vadd.f32 %v1709_v14, %v438_v46 }
 0x1d0   : > { %v456_v47 = vpack.c.bf16 %v450_v42, %v449_v41  ;;  %v439_v6 = vmul.f32 %v1702_v9, %v424_v45 }
 0x1d2   : > { %751 = vmatmul.mubr.bf16.gmra.mrb[4].mxu0 %v456_v47  ;;  %v454_v48 = vadd.f32 %v1709_v14, %v439_v6 }
 0x1d4   : > { %v458_v49 = vpack.c.bf16 %v454_v48, %v453_v12 }
 0x1d6   : > { %767 = vmatmul.mubr.bf16.gmra.mrb[4].mxu1 %v458_v49 }
 0x295   : > { %v1031_v50 = vpop.f32.mrb[0].mxu0 }
 0x296   : > { %v1032_v28 = vpop.f32.mrb[1].mxu0 }
 0x297   : > { %v1033_v53 = vadd.f32 %v1032_v28, %v1031_v50  ;;  %v1034_v54 = vpop.f32.mrb[2].mxu0 }
 0x298   : > { %v1035_v55 = vpop.f32.mrb[3].mxu0 }
 0x299   : > { %v1036_v56 = vadd.f32 %v1035_v55, %v1034_v54  ;;  %v1043_v57 = vpop.f32.mrb[0].mxu1  ;;  %v745_v35 = vadd.f32 %v1033_v53, %v951_v13 }
 0x29a   : > { %v1044_v9 = vpop.f32.mrb[1].mxu1 }
 0x29b   : > { %v748_v58 = vadd.f32 %v1036_v56, %v951_v13  ;;  %v1045_v59 = vadd.f32 %v1044_v9, %v1043_v57  ;;  %v1046_v62 = vpop.f32.mrb[2].mxu1 }
 0x29c   : > { %v1047_v14 = vpop.f32.mrb[3].mxu1 }
 0x29d   : > { %v995_v63 = vpack.c.bf16 %v748_v58, %v745_v35  ;;  %v1048_v0 = vadd.f32 %v1047_v14, %v1046_v62  ;;  %v761_v1 = vadd.f32 %v1045_v59, %v951_v13 }
 0x29f   : > { %996 = vst [vmem:[%s323_s0] sm:$0xff] %v995_v63   ;;  %v764_v2 = vadd.f32 %v1048_v0, %v951_v13 }
 0x2a1   : > { %v1005_v3 = vpack.c.bf16 %v764_v2, %v761_v1 }
 0x2a3   : > { %1013 = vst [vmem:[%s323_s0 + $0x10] sm:$0xff] %v1005_v3  }
 0x2a5   : > { %v1037_v36 = vpop.f32.mrb[4].mxu0 }
 0x2a6   : > { %v1038_v4 = vpop.f32.mrb[5].mxu0 }
 0x2a7   : > { %v1039_v7 = vadd.f32 %v1038_v4, %v1037_v36  ;;  %v1040_v43 = vpop.f32.mrb[6].mxu0 }
 0x2a8   : > { %v1041_v8 = vpop.f32.mrb[7].mxu0 }
 0x2a9   : > { %v1042_v10 = vadd.f32 %v1041_v8, %v1040_v43  ;;  %v1049_v11 = vpop.f32.mrb[4].mxu1  ;;  %v753_v17 = vadd.f32 %v1039_v7, %v951_v13 }
 0x2aa   : > { %v1050_v16 = vpop.f32.mrb[5].mxu1 }
 0x2ab   : > { %v756_v18 = vadd.f32 %v1042_v10, %v951_v13  ;;  %v1051_v19 = vadd.f32 %v1050_v16, %v1049_v11  ;;  %v1052_v22 = vpop.f32.mrb[6].mxu1 }
 0x2ac   : > { %v1053_v44 = vpop.f32.mrb[7].mxu1 }
 0x2ad   : > { %v1000_v23 = vpack.c.bf16 %v756_v18, %v753_v17  ;;  %v1054_v20 = vadd.f32 %v1053_v44, %v1052_v22  ;;  %v769_v51 = vadd.f32 %v1051_v19, %v951_v13 }
 0x2af   : > { %1012 = vst [vmem:[%s323_s0 + $0x8] sm:$0xff] %v1000_v23   ;;  %v772_v24 = vadd.f32 %v1054_v20, %v951_v13 }
 0x2b1   : > { %v1010_v25 = vpack.c.bf16 %v772_v24, %v769_v51 }
 0x2b3   : > { %1014 = vst [vmem:[%s323_s0 + $0x18] sm:$0xff] %v1010_v25  }
 0x2b4   : > { %1288 = shalt.err (!%p1285_p6)
}
 0x2b5   : > { %s1289_s27 = scalar_lea.hbm %s1766_s16, 512  ;;  %s1293_s30 = scalar_lea.hbm %s1816_s6, 1024 }
 0x2b6   : > { %p1290_p8 = scmp.ne.s32.totalorder %s1766_s16, %s1289_s27  ;;  %p1294_p4 = scmp.lt.u32.totalorder %s1766_s16, %s1816_s6 }
 0x2b7   : > { %p1295_p11 = scmp.lt.u32.totalorder %s1293_s30, %s1289_s27  ;;  %p1297_p3 = scmp.lt.u32.totalorder %s1289_s27, %s1766_s16 }
 0x2b8   : > { %p1291_p10 = pnand %p1290_p8, %p1487_p12 }
 0x2b9   : > { %p1296_p13 = por %p1295_p11, %p1294_p4 }
 0x2ba   : > { %p1292_p0 = pneg %p1291_p10 }
 0x2bb   : > { %p1298_p7 = por %p1297_p3, %p1296_p13 }
 0x2bd   : > { %p1299_p9 = pnand %p1298_p7, %p1292_p0 }
 0x2bf   : > { %1302 = shalt.err (!%p1299_p9)
}
 0x2c0   : > { %s1359_s10 = smov 64   ;;  %s1360_s0 = smov 4  }
 0x2c1   : > { %1079 = dma.vmem_to_hbm [thread:$0]  (%p1487_p12), %s1761_s17, 512, %s1766_s16, %s816_s11, %s1359_s10, %s1359_s10, %s1360_s0  }
 0x2c2 PF: > { %s844_s15 = sand.u32 1, %s1337_s21   ;;  %p1836_p1 = scmp.ne.s32.totalorder %s1823_s28, 0 }
 0x2c3   : > { %p1837_p5 = scmp.ge.s32.totalorder %s1349_s24, 2  ;;  %s845_s12 = scalar_lea.sflag [#allocation4], %s844_s15 }
 0x2c5   : > { %p1093_p2 = pnand %p1837_p5, %p1836_p1 }
 0x2c7   : > { %1332 = dma.done.wait (!%p1093_p2), %s845_s12, 512  }
 0x2c8   : > { %1334 = vsyncadd (!%p1093_p2), %s845_s12, 4294966784  ;;  %s1838_s7 = sld [smem:[#allocation13_spill]]  ;;  %p22_p6 = scmp.ge.s32.totalorder %s1452_s9, 4  }
 0x2c9   : > { %s1839_s21 = smov %s1341_s22  ;;  %s1840_s22 = smov %s1345_s23 }
 0x2ca   : > { %s1842_s24 = smov %s1452_s9  ;;  %24 = sbr.rel (!%p22_p6) target bundleno = 10 (0xa), region = 106 }
 0x2ce   : > { %s1841_s23 = smov %s1838_s7 }
 0x2d1   :  { %850 = vsyncpa [#allocation3], 1 }
 0x2d2   :  { %852 = vsyncpa [#allocation3 + $0x1], 1 }
 0x2d3   :  { %853 = vsyncpa [#allocation6], 1 }
 0x2d4   :  { %855 = vsyncpa [#allocation6 + $0x1], 1 }
 0x2d5   :  { %856 = vsyncpa [#allocation4], 1 }
 0x2d6   :  { %858 = vsyncpa [#allocation4 + $0x1], 1 }

</bundles_post_ra>
